<compile_context>
chip_gen: v7x
topology: tpu7x:2x2x1
jax: 0.10.0
libtpu: 0.0.40
codegen_flags: <defaults>
</compile_context>

<pallas_src>
import functools

import jax
import jax.numpy as jnp
from jax.experimental import pallas as pl
from jax.experimental.pallas import tpu as pltpu

LANE = 128
CHUNK_ROWS = 512                 # rows per in-kernel reduction chunk (f32 temps <= ~0.75 MiB)
TARGET_ROWS = 8192               # ~4 MiB f32 per input block (8192 x 128)
PAD_LOGIT = -1.0e4               # sigmoid(PAD_LOGIT) == 0 exactly in f32

_ARBITRARY = getattr(pltpu, "ARBITRARY", "arbitrary")
_PARALLEL = getattr(pltpu, "PARALLEL", "parallel")
_CORE_PARALLEL = getattr(pltpu, "CORE_PARALLEL", _PARALLEL)


@functools.lru_cache(maxsize=1)
def _core_split():
    """Return (#leading grid blocks, leading-axis dimension semantics)."""
    try:
        kind = jax.devices()[0].device_kind.lower()
    except Exception:
        return 1, _ARBITRARY
    if "v7" in kind:                   # 2 TensorCores per chip -> real split
        return 2, _CORE_PARALLEL
    if "v4" in kind or "v5p" in kind:  # megacore: "parallel" shards across TCs
        return 2, _PARALLEL
    return 1, _ARBITRARY               # v5e / v6e: single TC, a split is dead weight


def _dice_kernel(*refs, tm, w, chunk, nb_half, total_rows, full_blocks,
                 need_mask, has_mask):
    if has_mask:
        l_ref, t_ref, m_ref, oi_ref, op_ref, ot_ref = refs
    else:
        l_ref, t_ref, oi_ref, op_ref, ot_ref = refs
        m_ref = None

    i = pl.program_id(1)
    # Logical (un-clamped) block index: keeps the clamped duplicate block of
    # the second core fully masked out.
    blk = pl.program_id(0) * nb_half + i

    @pl.when(i == 0)
    def _():
        oi_ref[...] = jnp.zeros_like(oi_ref)
        op_ref[...] = jnp.zeros_like(op_ref)
        ot_ref[...] = jnp.zeros_like(ot_ref)

    def _compute(rows_start, size, apply_row_mask):
        lg = l_ref[pl.ds(rows_start, size), :].astype(jnp.float32)
        tg = t_ref[pl.ds(rows_start, size), :].astype(jnp.float32)
        pr = jax.nn.sigmoid(lg)
        if has_mask:
            pr = pr * m_ref[pl.ds(rows_start, size), :].astype(jnp.float32)
        if apply_row_mask:
            row = (blk * tm + rows_start
                   + jax.lax.broadcasted_iota(jnp.int32, (size, w), 0))
            valid = row < total_rows
            pr = jnp.where(valid, pr, 0.0)
            tg = jnp.where(valid, tg, 0.0)
        return pr, tg

    def _accumulate(apply_row_mask):
        if tm % 8 == 0:
            # fori_loop over chunks carrying three (8, w) f32 accumulators:
            # sigmoid/mul/sum stay chunk-sized (no full-block f32 temporaries),
            # and the fold is pure VPU adds (no per-step cross-lane reduce).
            nsteps = tm // chunk
            f = chunk // 8

            def body(s, carry):
                ai, ap, at = carry
                r0 = pl.multiple_of(s * chunk, chunk)
                pr, tg = _compute(r0, chunk, apply_row_mask)
                it = pr * tg
                ai = ai + it.reshape(f, 8, w).sum(axis=0)
                ap = ap + pr.reshape(f, 8, w).sum(axis=0)
                at = at + tg.reshape(f, 8, w).sum(axis=0)
                return ai, ap, at

            z = jnp.zeros((8, w), jnp.float32)
            ai, ap, at = jax.lax.fori_loop(0, nsteps, body, (z, z, z))
            oi_ref[...] += ai
            op_ref[...] += ap
            ot_ref[...] += at
        else:
            # Tiny ragged block (tm < 8 rows after lane padding).
            pr, tg = _compute(0, tm, apply_row_mask)
            it = pr * tg
            oi_ref[0:1, :] += jnp.sum(it, axis=0, keepdims=True)
            op_ref[0:1, :] += jnp.sum(pr, axis=0, keepdims=True)
            ot_ref[0:1, :] += jnp.sum(tg, axis=0, keepdims=True)

    if need_mask:
        # Only the tail / duplicate blocks pay the iota+select row mask.
        @pl.when(blk < full_blocks)
        def _():
            _accumulate(False)

        @pl.when(blk >= full_blocks)
        def _():
            _accumulate(True)
    else:
        _accumulate(False)


def _dice_partial_sums(l2, t2, m2):
    R, W = l2.shape
    has_mask = m2 is not None
    ncores, lead_sem = _core_split()

    # Row-tile: biggest lane-dense block up to ~1M elements (~4 MiB f32 per
    # input), chunked inside the kernel in CHUNK_ROWS slices.
    if R <= CHUNK_ROWS:
        tm, chunk = R, R
    else:
        tm = min(TARGET_ROWS, (R // CHUNK_ROWS) * CHUNK_ROWS)
        chunk = CHUNK_ROWS

    total_blocks = pl.cdiv(R, tm)
    nb_half = pl.cdiv(total_blocks, ncores)
    need_mask = (ncores * nb_half * tm != R)
    full_blocks = R // tm           # blocks that are entirely in-range
    last_blk = total_blocks - 1

    def in_map(c, i):
        # Clamp so DMAs never target a fully out-of-range block; the gated
        # in-kernel row mask (computed from the un-clamped `blk`) zeroes any
        # duplicated / ragged rows.
        return (jnp.minimum(c * nb_half + i, last_blk), 0)

    in_spec = pl.BlockSpec((tm, W), in_map)
    out_spec = pl.BlockSpec((8, W), lambda c, i: (c, 0))
    acc_shape = jax.ShapeDtypeStruct((ncores * 8, W), jnp.float32)

    inputs = [l2, t2] + ([m2] if has_mask else [])
    kernel = functools.partial(
        _dice_kernel, tm=tm, w=W, chunk=chunk, nb_half=nb_half, total_rows=R,
        full_blocks=full_blocks, need_mask=need_mask, has_mask=has_mask)

    # VMEM budget: double-buffered input blocks + chunk temporaries + slack.
    block_bytes = sum(tm * W * x.dtype.itemsize for x in inputs)
    vmem_limit = int(min(max(2 * block_bytes + (8 << 20), 16 << 20), 56 << 20))

    n_elems = l2.size
    in_bytes = sum(x.size * x.dtype.itemsize for x in inputs)
    cost = pl.CostEstimate(flops=3 * n_elems, transcendentals=n_elems,
                           bytes_accessed=in_bytes + 3 * ncores * 8 * W * 4)

    oi, op, ot = pl.pallas_call(
        kernel,
        out_shape=(acc_shape, acc_shape, acc_shape),
        grid_spec=pltpu.PrefetchScalarGridSpec(
            num_scalar_prefetch=0,
            grid=(ncores, nb_half),
            in_specs=[in_spec] * len(inputs),
            out_specs=[out_spec, out_spec, out_spec],
        ),
        compiler_params=pltpu.CompilerParams(
            dimension_semantics=(lead_sem, _ARBITRARY),
            vmem_limit_bytes=vmem_limit),
        cost_estimate=cost,
    )(*inputs)
    return oi, op, ot


@jax.jit
def _dice_loss_impl(logits, targets, mask, eps):
    n = logits.size
    n_pad = ((n + LANE - 1) // LANE) * LANE

    def _flat(x, pad_value):
        f = x.reshape(-1)
        if n_pad != n:
            # Lane-dense fallback: pad the flat stream to a multiple of 128.
            # Logits padded with -1e4 (sigmoid == 0), targets/mask with 0, so
            # padded elements contribute nothing to the sums.
            f = jnp.pad(f, (0, n_pad - n), constant_values=pad_value)
        return f.reshape(n_pad // LANE, LANE)

    l2 = _flat(logits, PAD_LOGIT)
    t2 = _flat(targets, 0)
    m2 = _flat(mask, 0) if mask is not None else None

    oi, op, ot = _dice_partial_sums(l2, t2, m2)
    inter = jnp.sum(oi)
    union = jnp.sum(op) + jnp.sum(ot)
    dice = (inter + eps) / (union + eps)
    return 1.0 - dice


def dice_loss(logits, targets, mask=None, eps=1e-6):
    """Pallas equivalent of DiceLoss.forward: 1 - (inter+eps)/(sum_p+sum_t+eps)."""
    logits = jnp.asarray(logits)
    targets = jnp.asarray(targets)
    if mask is not None:
        mask = jnp.asarray(mask)
        if mask.shape != logits.shape:
            # TODO(synk): stream a broadcastable (e.g. (N,1,H,W)) mask with its
            # own BlockSpec instead of materialising a full-size third stream.
            mask = jnp.broadcast_to(mask, logits.shape)
    return _dice_loss_impl(logits, targets, mask, eps)


def _dice_loss_ref(logits, targets, mask=None, eps=1e-6):
    probs = jax.nn.sigmoid(jnp.asarray(logits, jnp.float32))
    if mask is not None:
        probs = probs * jnp.asarray(mask, jnp.float32)
    p = probs.reshape(-1)
    t = jnp.asarray(targets, jnp.float32).reshape(-1)
    inter = jnp.sum(p * t)
    union = jnp.sum(p) + jnp.sum(t)
    return 1.0 - (inter + eps) / (union + eps)


if __name__ == "__main__":
    key = jax.random.PRNGKey(0)
    k1, k2, k3 = jax.random.split(key, 3)

    # shapes consistent with a typical segmentation head: N=2, C=4, H=W=16
    logits = jax.random.normal(k1, (2, 4, 16, 16), jnp.float32)
    targets = (jax.random.uniform(k2, (2, 4, 16, 16)) > 0.5).astype(jnp.float32)
    mask = (jax.random.uniform(k3, (2, 4, 16, 16)) > 0.2).astype(jnp.float32)

    # no-mask case (only 2 arrays streamed)
    out = jax.block_until_ready(dice_loss(logits, targets))
    ref = _dice_loss_ref(logits, targets)
    assert jnp.allclose(out, ref, atol=1e-5, rtol=1e-5), (out, ref)

    # masked case
    out_m = jax.block_until_ready(dice_loss(logits, targets, mask=mask))
    ref_m = _dice_loss_ref(logits, targets, mask=mask)
    assert jnp.allclose(out_m, ref_m, atol=1e-5, rtol=1e-5), (out_m, ref_m)

    # odd shape: exercises lane-padding fallback + (possibly) gated tail mask
    lg2 = jax.random.normal(jax.random.fold_in(key, 5), (3, 5, 7), jnp.float32)
    tg2 = (jax.random.uniform(jax.random.fold_in(key, 7), (3, 5, 7)) > 0.5
           ).astype(jnp.float32)
    out2 = jax.block_until_ready(dice_loss(lg2, tg2))
    ref2 = _dice_loss_ref(lg2, tg2)
    assert jnp.allclose(out2, ref2, atol=1e-5, rtol=1e-5), (out2, ref2)

    # larger lane-dense bf16 case: multi-chunk fori_loop path, bigger blocks
    lg3 = jax.random.normal(jax.random.fold_in(key, 11), (4, 16, 64, 128),
                            jnp.float32).astype(jnp.bfloat16)
    tg3 = (jax.random.uniform(jax.random.fold_in(key, 13), (4, 16, 64, 128))
           > 0.5).astype(jnp.bfloat16)
    out3 = jax.block_until_ready(dice_loss(lg3, tg3))
    ref3 = _dice_loss_ref(lg3, tg3)
    assert jnp.allclose(out3, ref3, atol=2e-3, rtol=2e-3), (out3, ref3)

    print("KERNEL_OK")
</pallas_src>

<mosaic_0001>
module attributes {stable_mosaic.version = 11 : i64} {
  func.func @_dice_kernel(%arg0: i32, %arg1: i32, %arg2: memref<16x128xf32, #tpu.memory_space<vmem>>, %arg3: memref<16x128xf32, #tpu.memory_space<vmem>>, %arg4: memref<8x128xf32, #tpu.memory_space<vmem>>, %arg5: memref<8x128xf32, #tpu.memory_space<vmem>>, %arg6: memref<8x128xf32, #tpu.memory_space<vmem>>) attributes {dimension_semantics = [#tpu.dimension_semantics<arbitrary>, #tpu.dimension_semantics<arbitrary>], iteration_bounds = array<i64: 1, 1>, scalar_prefetch = 0 : i64, scratch_operands = 0 : i64, tpu.core_type = #tpu.core_type<tc>, window_params = [{transform_indices = @transform_0, window_bounds = array<i64: 16, 128>}, {transform_indices = @transform_1, window_bounds = array<i64: 16, 128>}, {transform_indices = @transform_2, window_bounds = array<i64: 8, 128>}, {transform_indices = @transform_3, window_bounds = array<i64: 8, 128>}, {transform_indices = @transform_4, window_bounds = array<i64: 8, 128>}]} {
    %c0_i32 = arith.constant 0 : i32
    %0 = arith.cmpi eq, %arg1, %c0_i32 : i32
    %1 = arith.extui %0 : i1 to i32
    %c0_i32_0 = arith.constant 0 : i32
    %2 = arith.cmpi ne, %1, %c0_i32_0 : i32
    scf.if %2 {
      %cst_19 = arith.constant 0.000000e+00 : f32
      %34 = vector.broadcast %cst_19 : f32 to vector<8x128xf32>
      %c0_20 = arith.constant 0 : index
      %c0_21 = arith.constant 0 : index
      %35 = vector.load %arg4[%c0_20, %c0_21] : memref<8x128xf32, #tpu.memory_space<vmem>>, vector<8x128xf32>
      tpu.vector_store %arg4[%c0_20, %c0_21], %34 {strides = array<i32>} : memref<8x128xf32, #tpu.memory_space<vmem>>, vector<8x128xf32>,
      %cst_22 = arith.constant 0.000000e+00 : f32
      %36 = vector.broadcast %cst_22 : f32 to vector<8x128xf32>
      %c0_23 = arith.constant 0 : index
      %c0_24 = arith.constant 0 : index
      %37 = vector.load %arg5[%c0_23, %c0_24] : memref<8x128xf32, #tpu.memory_space<vmem>>, vector<8x128xf32>
      tpu.vector_store %arg5[%c0_23, %c0_24], %36 {strides = array<i32>} : memref<8x128xf32, #tpu.memory_space<vmem>>, vector<8x128xf32>,
      %cst_25 = arith.constant 0.000000e+00 : f32
      %38 = vector.broadcast %cst_25 : f32 to vector<8x128xf32>
      %c0_26 = arith.constant 0 : index
      %c0_27 = arith.constant 0 : index
      %39 = vector.load %arg6[%c0_26, %c0_27] : memref<8x128xf32, #tpu.memory_space<vmem>>, vector<8x128xf32>
      tpu.vector_store %arg6[%c0_26, %c0_27], %38 {strides = array<i32>} : memref<8x128xf32, #tpu.memory_space<vmem>>, vector<8x128xf32>,
    } else {
    }
    %cst = arith.constant 0.000000e+00 : f32
    %3 = vector.broadcast %cst : f32 to vector<8x128xf32>
    %c0_i32_1 = arith.constant 0 : i32
    %c16_i32 = arith.constant 16 : i32
    %4 = arith.muli %c0_i32_1, %c16_i32 : i32
    %5 = tpu.assume_multiple %4, 16 : i32
    %6 = arith.index_cast %5 : i32 to index
    %c0 = arith.constant 0 : index
    %7 = vector.load %arg2[%6, %c0] : memref<16x128xf32, #tpu.memory_space<vmem>>, vector<16x128xf32>
    %8 = arith.index_cast %5 : i32 to index
    %c0_2 = arith.constant 0 : index
    %9 = vector.load %arg3[%8, %c0_2] : memref<16x128xf32, #tpu.memory_space<vmem>>, vector<16x128xf32>
    %10 = arith.negf %7 : vector<16x128xf32>
    %11 = math.exp %10 : vector<16x128xf32>
    %cst_3 = arith.constant 1.000000e+00 : f32
    %12 = vector.broadcast %cst_3 : f32 to vector<16x128xf32>
    %13 = arith.addf %12, %11 : vector<16x128xf32>
    %14 = arith.divf %12, %13 : vector<16x128xf32>
    %15 = arith.mulf %14, %9 : vector<16x128xf32>
    %16 = vector.shape_cast %15 : vector<16x128xf32> to vector<2x8x128xf32>
    %cst_4 = arith.constant dense<0.000000e+00> : vector<8x128xf32>
    %17 = vector.multi_reduction <add>, %16, %cst_4 [0] : vector<2x8x128xf32> to vector<8x128xf32>
    %18 = arith.addf %3, %17 : vector<8x128xf32>
    %19 = vector.shape_cast %14 : vector<16x128xf32> to vector<2x8x128xf32>
    %cst_5 = arith.constant dense<0.000000e+00> : vector<8x128xf32>
    %20 = vector.multi_reduction <add>, %19, %cst_5 [0] : vector<2x8x128xf32> to vector<8x128xf32>
    %21 = arith.addf %3, %20 : vector<8x128xf32>
    %22 = vector.shape_cast %9 : vector<16x128xf32> to vector<2x8x128xf32>
    %cst_6 = arith.constant dense<0.000000e+00> : vector<8x128xf32>
    %23 = vector.multi_reduction <add>, %22, %cst_6 [0] : vector<2x8x128xf32> to vector<8x128xf32>
    %24 = arith.addf %3, %23 : vector<8x128xf32>
    %c1_i32 = arith.constant 1 : i32
    %c0_7 = arith.constant 0 : index
    %c0_8 = arith.constant 0 : index
    %25 = vector.load %arg4[%c0_7, %c0_8] : memref<8x128xf32, #tpu.memory_space<vmem>>, vector<8x128xf32>
    %26 = arith.addf %25, %18 : vector<8x128xf32>
    %c0_9 = arith.constant 0 : index
    %c0_10 = arith.constant 0 : index
    %27 = vector.load %arg4[%c0_9, %c0_10] : memref<8x128xf32, #tpu.memory_space<vmem>>, vector<8x128xf32>
    tpu.vector_store %arg4[%c0_9, %c0_10], %26 {strides = array<i32>} : memref<8x128xf32, #tpu.memory_space<vmem>>, vector<8x128xf32>,
    %c0_11 = arith.constant 0 : index
    %c0_12 = arith.constant 0 : index
    %28 = vector.load %arg5[%c0_11, %c0_12] : memref<8x128xf32, #tpu.memory_space<vmem>>, vector<8x128xf32>
    %29 = arith.addf %28, %21 : vector<8x128xf32>
    %c0_13 = arith.constant 0 : index
    %c0_14 = arith.constant 0 : index
    %30 = vector.load %arg5[%c0_13, %c0_14] : memref<8x128xf32, #tpu.memory_space<vmem>>, vector<8x128xf32>
    tpu.vector_store %arg5[%c0_13, %c0_14], %29 {strides = array<i32>} : memref<8x128xf32, #tpu.memory_space<vmem>>, vector<8x128xf32>,
    %c0_15 = arith.constant 0 : index
    %c0_16 = arith.constant 0 : index
    %31 = vector.load %arg6[%c0_15, %c0_16] : memref<8x128xf32, #tpu.memory_space<vmem>>, vector<8x128xf32>
    %32 = arith.addf %31, %24 : vector<8x128xf32>
    %c0_17 = arith.constant 0 : index
    %c0_18 = arith.constant 0 : index
    %33 = vector.load %arg6[%c0_17, %c0_18] : memref<8x128xf32, #tpu.memory_space<vmem>>, vector<8x128xf32>
    tpu.vector_store %arg6[%c0_17, %c0_18], %32 {strides = array<i32>} : memref<8x128xf32, #tpu.memory_space<vmem>>, vector<8x128xf32>,
    return
  }
  func.func @transform_0(%arg0: i32, %arg1: i32) -> (i32, i32) {
    %c1_i32 = arith.constant 1 : i32
    %0 = arith.muli %arg0, %c1_i32 : i32
    %1 = arith.addi %0, %arg1 : i32
    %c0_i32 = arith.constant 0 : i32
    %2 = arith.minsi %1, %c0_i32 : i32
    %c0_i32_0 = arith.constant 0 : i32
    %c0_i32_1 = arith.constant 0 : i32
    return %2, %c0_i32_0 : i32, i32
  }
  func.func @transform_1(%arg0: i32, %arg1: i32) -> (i32, i32) {
    %c1_i32 = arith.constant 1 : i32
    %0 = arith.muli %arg0, %c1_i32 : i32
    %1 = arith.addi %0, %arg1 : i32
    %c0_i32 = arith.constant 0 : i32
    %2 = arith.minsi %1, %c0_i32 : i32
    %c0_i32_0 = arith.constant 0 : i32
    %c0_i32_1 = arith.constant 0 : i32
    return %2, %c0_i32_0 : i32, i32
  }
  func.func @transform_2(%arg0: i32, %arg1: i32) -> (i32, i32) {
    %c0_i32 = arith.constant 0 : i32
    %c0_i32_0 = arith.constant 0 : i32
    return %arg0, %c0_i32 : i32, i32
  }
  func.func @transform_3(%arg0: i32, %arg1: i32) -> (i32, i32) {
    %c0_i32 = arith.constant 0 : i32
    %c0_i32_0 = arith.constant 0 : i32
    return %arg0, %c0_i32 : i32, i32
  }
  func.func @transform_4(%arg0: i32, %arg1: i32) -> (i32, i32) {
    %c0_i32 = arith.constant 0 : i32
    %c0_i32_0 = arith.constant 0 : i32
    return %arg0, %c0_i32 : i32, i32
  }
}

</mosaic_0001>

<bundles_post_ra>
// kernel: _dice_loss_impl.1
= control target key start
LH: loop header
LB: loop body
LE: loop exit
PB: predicated region body
PF: predicated region fallthrough
CT: control target
= control target key end

     0   :  { %s199_s0 = inlined_call_operand.vmem [shape: f32[16,128], index: 0, kind: input, shape index: {}]   ;;  %s200_s1 = inlined_call_operand.vmem [shape: f32[16,128], index: 1, kind: input, shape index: {}]   ;;  %s201_s4 = inlined_call_operand.vmem [shape: f32[8,128], index: 4, kind: output, shape index: {2}]   ;;  %s202_s3 = inlined_call_operand.vmem [shape: f32[8,128], index: 3, kind: output, shape index: {1}]   ;;  %s203_s2 = inlined_call_operand.vmem [shape: f32[8,128], index: 2, kind: output, shape index: {0}]  }
   0x1   :  { %v85_v0 = vld [vmem:[%s199_s0] sm:$0xff]  ;;  %v86_v1 = vld [vmem:[%s199_s0 + $0x8] sm:$0xff] }
   0x2   :  { %v87_v2 = vld [vmem:[%s200_s1] sm:$0xff]  ;;  %v88_v3 = vld [vmem:[%s200_s1 + $0x8] sm:$0xff]  ;;  %v142_v4 = vmul.f32 -1.442695, %v85_v0  ;;  %v143_v5 = vmul.f32 -1.442695, %v86_v1 }
   0x3   :  { %v107_v6 = vadd.f32 %v88_v3, %v87_v2 }
   0x4   :  { %145 = vpow2.f32 %v142_v4 }
   0x5   :  { %147 = vpow2.f32 %v143_v5  ;;  %117 = vst [vmem:[%s201_s4] sm:$0xff] %v107_v6 }
   0xe   :  { %v146_v7 = vpop.eup %145 }
   0xf   :  { %v148_v8 = vpop.eup %147  ;;  %v95_v9 = vadd.f32 1.0, %v146_v7 }
  0x10   :  { %v96_v10 = vadd.f32 1.0, %v148_v8 }
  0x11   :  { %149 = vrcp.f32 %v95_v9 }
  0x12   :  { %151 = vrcp.f32 %v96_v10 }
  0x1b   :  { %v150_v11 = vpop.eup %149 }
  0x1c   :  { %v152_v12 = vpop.eup %151  ;;  %v101_v13 = vmul.f32 %v150_v11, %v87_v2 }
  0x1d   :  { %v102_v14 = vmul.f32 %v152_v12, %v88_v3  ;;  %v105_v15 = vadd.f32 %v152_v12, %v150_v11 }
  0x1f   :  { %v103_v16 = vadd.f32 %v102_v14, %v101_v13  ;;  %114 = vst [vmem:[%s202_s3] sm:$0xff] %v105_v15 }
  0x21   :  { %111 = vst [vmem:[%s203_s2] sm:$0xff] %v103_v16 }

</bundles_post_ra>
